<compile_context>
chip_gen: v7x
topology: tpu7x:2x2x1
jax: 0.10.0
libtpu: 0.0.40
codegen_flags: <defaults>
</compile_context>

<pallas_src>
import jax
import jax.numpy as jnp
from jax.experimental import pallas as pl
from jax.experimental.pallas import tpu as pltpu


def add_layers_kernel(w_ref, x_ref, o_ref):
    # w_ref: SMEM (1,) folded scalar weight (w0 + w1 + w2) in f32.
    # x_ref / o_ref: VMEM tiles of the flattened input / output.
    w = w_ref[0]
    o_ref[...] = (x_ref[...].astype(jnp.float32) + w).astype(o_ref.dtype)


def _sublane(dtype):
    # Sublane packing: 8 rows for 32-bit, 16 for 16-bit, 32 for 8-bit dtypes.
    itemsize = jnp.dtype(dtype).itemsize
    return max(8, 32 // max(1, itemsize))


def _budget():
    # (target block bytes, vmem limit bytes) per TPU generation.
    try:
        kind = jax.devices()[0].device_kind.lower()
    except Exception:
        kind = ""
    if "v5" in kind or "v6" in kind:
        # 128 MiB physical VMEM: bigger tiles amortise per-step overhead.
        return 8 * 1024 * 1024, 64 * 1024 * 1024
    # v7x (64 MiB VMEM per TC) or unknown: stay conservative.
    return 4 * 1024 * 1024, 32 * 1024 * 1024


def _pick_cols(total, sub):
    # Largest divisor of `total` that is a multiple of 128 (cap 8192),
    # preferring one that still leaves rows >= sublane count.
    cap = min(8192, total)
    cap -= cap % 128
    best = None
    for c in range(cap, 0, -128):
        if total % c == 0:
            if best is None:
                best = c
            if total // c >= sub:
                return c
    return best


def add_layers_forward(x, w0, w1, w2, *, training=False, donate_x=False):
    """x: any-shape float tensor. w0/w1/w2: scalar learnable weights, shape (1,)."""
    orig_shape = x.shape
    total = int(x.size)
    itemsize = jnp.dtype(x.dtype).itemsize
    total_bytes = total * itemsize
    sub = _sublane(x.dtype)
    target_bytes, vmem_limit = _budget()

    # ---- choose a lane-dense 2D slab (rows, cols) -------------------------
    cols = _pick_cols(total, sub)
    if cols is not None:
        rows = total // cols
    else:
        # Rare fallback (total not divisible by 128): keep the trailing dims
        # together; the col axis is tiled below so blocks never blow VMEM.
        if x.ndim >= 2:
            cols = int(orig_shape[-1] * orig_shape[-2])
        else:
            cols = total
        rows = max(1, total // cols)
    x2d = x.reshape(rows, cols)

    # ---- column tiling (only needed when a single row exceeds the budget) --
    bytes_per_row = cols * itemsize
    if bytes_per_row <= target_bytes:
        tile_cols = cols                                   # full extent (exempt)
    else:
        tile_cols = max(128, (target_bytes // itemsize) // 128 * 128)

    # ---- row tiling, sublane aligned ---------------------------------------
    block_row_bytes = tile_cols * itemsize
    if rows >= sub:
        budget_rows = max(sub, (target_bytes // block_row_bytes) // sub * sub)
        tile_rows = min(rows, budget_rows)
        tile_rows = max(sub, (tile_rows // sub) * sub)
    else:
        tile_rows = rows                                   # full extent (exempt)

    num_col_blocks = pl.cdiv(cols, tile_cols)
    num_row_blocks = pl.cdiv(rows, tile_rows)

    # ---- force >= 4 grid steps for non-trivial arrays (pipelining + v7x) ---
    MIN_MULTISTEP_BYTES = 2 * 1024 * 1024
    if total_bytes >= MIN_MULTISTEP_BYTES and num_row_blocks * num_col_blocks < 4:
        want_r = -(-4 // num_col_blocks)                   # ceil(4 / col blocks)
        if rows >= sub * want_r:
            cap_rows = max(sub, (-(-rows // want_r)) // sub * sub)
            tile_rows = min(tile_rows, cap_rows)
            num_row_blocks = pl.cdiv(rows, tile_rows)

    # ---- fold the three scalar weights on the wrapper side -----------------
    w_sum = (w0.reshape(-1) + w1.reshape(-1) + w2.reshape(-1)).astype(jnp.float32)

    cost = pl.CostEstimate(
        flops=total, transcendentals=0, bytes_accessed=2 * total_bytes + 4
    )

    kwargs = {}
    if donate_x:
        # Inputs to pallas_call are (w_sum, x2d) -> alias x2d (index 1) to output 0.
        kwargs["input_output_aliases"] = {1: 0}

    out2d = pl.pallas_call(
        add_layers_kernel,
        out_shape=jax.ShapeDtypeStruct((rows, cols), x2d.dtype),
        grid_spec=pltpu.PrefetchScalarGridSpec(
            num_scalar_prefetch=0,
            grid=(num_row_blocks, num_col_blocks),
            in_specs=[
                pl.BlockSpec(memory_space=pltpu.MemorySpace.SMEM),
                pl.BlockSpec((tile_rows, tile_cols), lambda i, j: (i, j)),
            ],
            out_specs=pl.BlockSpec((tile_rows, tile_cols), lambda i, j: (i, j)),
        ),
        compiler_params=pltpu.CompilerParams(
            dimension_semantics=("parallel", "parallel"),
            vmem_limit_bytes=vmem_limit,
        ),
        cost_estimate=cost,
        **kwargs,
    )(w_sum, x2d)

    y = out2d.reshape(orig_shape)
    if training:
        return {"output": y}
    return y


if __name__ == "__main__":
    # Deterministic parameter init, matching AddOne.__init__: weight = [1.0] each.
    w0 = jnp.array([1.0], dtype=jnp.float32)
    w1 = jnp.array([1.0], dtype=jnp.float32)
    w2 = jnp.array([1.0], dtype=jnp.float32)

    key = jax.random.PRNGKey(0)
    k_small, k_big = jax.random.split(key)

    # Primary small test (matches the PyTorch test scale): NCHW = (2, 4, 16, 16).
    x = jax.random.normal(k_small, (2, 4, 16, 16), dtype=jnp.float32)
    y = jax.block_until_ready(add_layers_forward(x, w0, w1, w2, training=False))
    expected = x + (w0[0] + w1[0] + w2[0])
    assert y.shape == x.shape
    assert jnp.allclose(y, expected, atol=1e-6), "eval-mode mismatch vs reference"

    # Training mode returns a dict with the same tensor.
    out_train = add_layers_forward(x, w0, w1, w2, training=True)
    assert jnp.allclose(out_train["output"], expected, atol=1e-6), "train-mode mismatch"

    # Secondary check: lane-dense re-split (cols=8192, rows=140), forced multi-step
    # grid (>=4 row blocks) and a masked partial tail row block.
    x_big = jax.random.normal(k_big, (4, 70, 32, 128), dtype=jnp.float32)
    y_big = jax.block_until_ready(add_layers_forward(x_big, w0, w1, w2))
    assert jnp.allclose(y_big, x_big + 3.0, atol=1e-6), "tail-block mismatch"

    # Odd spatial size (H*W = 49, total not a multiple of... actually 2*3*7*7=294
    # is not divisible by 128) exercises the non-lane-dense fallback path.
    x_odd = jax.random.normal(key, (2, 3, 7, 7), dtype=jnp.float32)
    y_odd = jax.block_until_ready(add_layers_forward(x_odd, w0, w1, w2))
    assert jnp.allclose(y_odd, x_odd + 3.0, atol=1e-6), "fallback-path mismatch"

    print("KERNEL_OK")
</pallas_src>

<mosaic_0001>
module attributes {stable_mosaic.version = 11 : i64} {
  func.func @add_layers_kernel(%arg0: i32, %arg1: i32, %arg2: memref<1xf32, #tpu.memory_space<smem>>, %arg3: memref<8x256xf32, #tpu.memory_space<vmem>>, %arg4: memref<8x256xf32, #tpu.memory_space<vmem>>) attributes {dimension_semantics = [#tpu.dimension_semantics<parallel>, #tpu.dimension_semantics<parallel>], iteration_bounds = array<i64: 1, 1>, scalar_prefetch = 0 : i64, scratch_operands = 0 : i64, tpu.core_type = #tpu.core_type<tc>, window_params = [{transform_indices = @transform_0, window_bounds = array<i64: 1>}, {transform_indices = @transform_1, window_bounds = array<i64: 8, 256>}, {transform_indices = @transform_2, window_bounds = array<i64: 8, 256>}]} {
    %c0 = arith.constant 0 : index
    %0 = memref.load %arg2[%c0] : memref<1xf32, #tpu.memory_space<smem>>
    %c0_0 = arith.constant 0 : index
    %c0_1 = arith.constant 0 : index
    %1 = vector.load %arg3[%c0_0, %c0_1] : memref<8x256xf32, #tpu.memory_space<vmem>>, vector<8x256xf32>
    %2 = vector.broadcast %0 : f32 to vector<8x256xf32>
    %3 = arith.addf %1, %2 : vector<8x256xf32>
    %c0_2 = arith.constant 0 : index
    %c0_3 = arith.constant 0 : index
    %4 = vector.load %arg4[%c0_2, %c0_3] : memref<8x256xf32, #tpu.memory_space<vmem>>, vector<8x256xf32>
    tpu.vector_store %arg4[%c0_2, %c0_3], %3 {strides = array<i32>} : memref<8x256xf32, #tpu.memory_space<vmem>>, vector<8x256xf32>,
    return
  }
  func.func @transform_0(%arg0: i32, %arg1: i32) -> i32 {
    %c0_i32 = arith.constant 0 : i32
    %c0_i32_0 = arith.constant 0 : i32
    return %c0_i32 : i32
  }
  func.func @transform_1(%arg0: i32, %arg1: i32) -> (i32, i32) {
    %c0_i32 = arith.constant 0 : i32
    return %arg0, %arg1 : i32, i32
  }
  func.func @transform_2(%arg0: i32, %arg1: i32) -> (i32, i32) {
    %c0_i32 = arith.constant 0 : i32
    return %arg0, %arg1 : i32, i32
  }
}

</mosaic_0001>

<bundles_post_ra>
// kernel: tpu_custom_call.1
= control target key start
LH: loop header
LB: loop body
LE: loop exit
PB: predicated region body
PF: predicated region fallthrough
CT: control target
= control target key end

     0   :  { %8 = vsyncpa [#allocation4], 0  ;;  %s142_s0 = inlined_call_operand.<no memory space> [shape: f32[1], index: 0, kind: input, shape index: {}]   ;;  %s143_s1 = inlined_call_operand.hbm [shape: f32[8,256], index: 1, kind: input, shape index: {}]   ;;  %s144_s2 = inlined_call_operand.hbm [shape: f32[8,256], index: 2, kind: output, shape index: {}]  }
   0x1   :  { %9 = vsyncpa [#allocation5], 0  ;;  %s98_s9 = smov [#allocation3]   ;;  %s50_s13 = scalar_lea.hbm %s143_s1, 256 }
   0x2   :  { %s18_s10 = sshll.u32 %s98_s9, 4  ;;  %p51_p0 = scmp.ne.s32.totalorder %s143_s1, %s50_s13  ;;  %s19_s10 = int_to_ptr.vmem [resolvable:$true] %s18_s10 }
   0x3   :  { %p54_p1 = scmp.lt.u32.totalorder %s50_s13, %s143_s1 }
   0x5   :  { %p56_p2 = pnand %p54_p1, %p51_p0 }
   0x7   :  { %59 = shalt.err (!%p56_p2)
}
   0x8   :  { %s60_s18 = scalar_lea.vmem %s19_s10, 256  ;;  %p65_p4 = scmp.lt.s32.totalorder %s19_s10, %s19_s10 }
   0x9   :  { %p61_p3 = scmp.ne.s32.totalorder %s19_s10, %s60_s18  ;;  %p66_p5 = scmp.lt.s32.totalorder %s60_s18, %s60_s18 }
   0xb   :  { %p67_p6 = por %p66_p5, %p65_p4 }
   0xd   :  { %p68_p7 = pnand %p67_p6, %p61_p3 }
   0xf   :  { %71 = shalt.err (!%p68_p7)
}
  0x10   :  { %21 = dma.hbm_to_vmem [thread:$0]  %s143_s1, 256, %s19_s10, [#allocation4]  }
  0x11   :  { %94 = dma.done.wait [#allocation4], 256  }
  0x12   :  { %95 = vsyncadd [#allocation4], 4294967040  ;;  %v28_v0 = vstv %s142_s0  ;;  %s99_s23 = smov [#allocation6]   ;;  %v26_v1 = vld [vmem:[#allocation3] sm:$0xff]  ;;  %v27_v2 = vld [vmem:[#allocation3 + $0x8] sm:$0xff] }
  0x13   :  { %s39_s24 = sshll.u32 %s99_s23, 4  ;;  %v29_v3 = vadd.f32 %v28_v0, %v26_v1  ;;  %v30_v4 = vadd.f32 %v28_v0, %v27_v2  ;;  %s40_s24 = int_to_ptr.vmem [resolvable:$true] %s39_s24 }
  0x14   :  { %s72_s25 = scalar_lea.vmem %s40_s24, 256  ;;  %p77_p9 = scmp.lt.s32.totalorder %s40_s24, %s40_s24 }
  0x15   :  { %31 = vst [vmem:[#allocation6] sm:$0xff] %v29_v3  ;;  %32 = vst [vmem:[#allocation6 + $0x8] sm:$0xff] %v30_v4  ;;  %p73_p8 = scmp.ne.s32.totalorder %s40_s24, %s72_s25  ;;  %p78_p10 = scmp.lt.s32.totalorder %s72_s25, %s72_s25 }
  0x17   :  { %p79_p11 = por %p78_p10, %p77_p9 }
  0x19   :  { %p80_p12 = pnand %p79_p11, %p73_p8 }
  0x1b   :  { %83 = shalt.err (!%p80_p12)
}
  0x1c   :  { %s84_s0 = scalar_lea.hbm %s144_s2, 256 }
  0x1d   :  { %p85_p13 = scmp.ne.s32.totalorder %s144_s2, %s84_s0  ;;  %p88_p0 = scmp.lt.u32.totalorder %s84_s0, %s144_s2 }
  0x1f   :  { %p90_p1 = pnand %p88_p0, %p85_p13 }
  0x21   :  { %93 = shalt.err (!%p90_p1)
}
  0x22   :  { %42 = dma.vmem_to_hbm [thread:$0]  %s40_s24, 256, %s144_s2, [#allocation5]  }
  0x23   :  { %96 = dma.done.wait [#allocation5], 256  }
  0x24   :  { %97 = vsyncadd [#allocation5], 4294967040 }
  0x25   :  { %46 = vsyncpa [#allocation4], 1 }
  0x26   :  { %47 = vsyncpa [#allocation5], 1 }

</bundles_post_ra>
